<compile_context>
chip_gen: v6e
topology: v6e:2x2x1
jax: 0.10.0
libtpu: 0.0.40
codegen_flags: <defaults>
</compile_context>

<pallas_src>
import functools

import jax
import jax.numpy as jnp
from jax.experimental import pallas as pl
from jax.experimental.pallas import tpu as pltpu


def _mbstd_kernel(x_ref, o_ref, *, epsilon, f, tile_f, tiles_per_split):
    """One (g, m, tile_f) tile -> partial sum over F of per-feature group std."""
    s = pl.program_id(0)           # F-split index ("parallel": feeds both TCs on v7x)
    fk = pl.program_id(1)          # F-tile index within the split ("arbitrary")
    t = s * tiles_per_split + fk   # global (unclamped) tile index, for masking

    x = x_ref[...].astype(jnp.float32)            # (g, m, tile_f), cast under the DMA
    mu = jnp.mean(x, axis=0, keepdims=True)       # (1, m, tile_f)  mean over group
    d = x - mu
    var = jnp.mean(d * d, axis=0)                 # (m, tile_f)     biased variance
    std = jnp.sqrt(var + epsilon)                 # (m, tile_f)

    # Mask lanes past the end of F (ragged last tile / clamped OOB tiles).
    col = jax.lax.broadcasted_iota(jnp.int32, std.shape, dimension=1)
    valid = (t * tile_f + col) < f
    std = jnp.where(valid, std, 0.0)

    partial = jnp.sum(std, axis=1, keepdims=True)  # (m, 1) partial sum over this tile

    @pl.when(fk == 0)
    def _():
        o_ref[...] = jnp.zeros_like(o_ref)

    # Lane-dense resident accumulator block (1, m, 128); wrapper reads lane 0.
    o_ref[...] += jnp.broadcast_to(partial, o_ref.shape[1:])[None]


@functools.partial(jax.jit,
                   static_argnames=("group_size", "epsilon", "max_tile_bytes"))
def minibatch_std_layer(x, group_size=16, epsilon=1e-8, max_tile_bytes=4 << 20):
    """Forward pass of MiniBatchSTDLayer.  x: (N, C, H, W)."""
    if group_size <= 1:
        return x
    n, c, h, w = x.shape
    g = min(group_size, n)
    assert n % g == 0, "batch must be divisible by group size (same as torch.view)"
    m = n // g
    f = c * h * w
    itemsize = jnp.dtype(x.dtype).itemsize

    # Free view of NCHW in its native dtype: batch index nb = g_idx * m + m_idx,
    # identical grouping to torch's x.view(group_size, -1, C, H, W).
    xg = x.reshape(g, m, f)

    # F tiling: cap one input buffer at ~max_tile_bytes so the double-buffered
    # pipeline stays well inside scoped VMEM on v5e/v6e/v7x at any resolution.
    max_tile_f = max(128, max_tile_bytes // (n * itemsize) // 128 * 128)
    if f <= max_tile_f:
        tile_f, num_tiles = f, 1
    else:
        tile_f, num_tiles = max_tile_f, pl.cdiv(f, max_tile_f)

    # Split the F tiles across a small leading "parallel" axis (2-way) so both
    # TensorCores on v7x get work even when m == 1.  Neutral on v5e/v6e.
    n_splits = 2 if num_tiles >= 2 else 1
    tiles_per_split = pl.cdiv(num_tiles, n_splits)
    last_tile = num_tiles - 1

    def in_map(s, fk):
        # Clamp: a fully out-of-range tile re-reads the last valid tile (in
        # bounds for the DMA) and is zeroed by the in-kernel mask.
        return (0, 0, jnp.minimum(s * tiles_per_split + fk, last_tile))

    needed = 2 * n * tile_f * itemsize + 2 * n_splits * m * 128 * 4
    vmem_limit = int(min(32 << 20, max(16 << 20, needed + (4 << 20))))

    partials = pl.pallas_call(
        functools.partial(_mbstd_kernel, epsilon=epsilon, f=f, tile_f=tile_f,
                          tiles_per_split=tiles_per_split),
        out_shape=jax.ShapeDtypeStruct((n_splits, m, 128), jnp.float32),
        grid_spec=pltpu.PrefetchScalarGridSpec(
            num_scalar_prefetch=0,
            grid=(n_splits, tiles_per_split),
            in_specs=[pl.BlockSpec((g, m, tile_f), in_map)],
            out_specs=pl.BlockSpec((1, m, 128), lambda s, fk: (s, 0, 0)),
        ),
        compiler_params=pltpu.CompilerParams(
            dimension_semantics=("parallel", "arbitrary"),
            vmem_limit_bytes=vmem_limit),
    )(xg)

    # Combine the split partial sums and finish the mean over C*H*W.
    stats = partials[:, :, 0].sum(axis=0) / f                # (m,) f32
    # torch: y.repeat(group_size, 1, H, W) -> sample nb receives stats[nb % m]
    y = jnp.broadcast_to(stats.reshape(1, m, 1, 1, 1), (g, m, 1, h, w))
    y = y.reshape(n, 1, h, w).astype(x.dtype)
    return jnp.concatenate([x, y], axis=1)


def _reference(x, group_size=16, epsilon=1e-8):
    if group_size <= 1:
        return x
    n, c, h, w = x.shape
    g = min(group_size, n)
    y = x.reshape(g, -1, c, h, w)
    y = y - jnp.mean(y, axis=0, keepdims=True)
    y = jnp.mean(y ** 2, axis=0)
    y = jnp.sqrt(y + epsilon)
    y = jnp.mean(y, axis=(1, 2, 3), keepdims=True)
    y = jnp.tile(y, (g, 1, h, w))
    return jnp.concatenate([x, y], axis=1)


if __name__ == "__main__":
    key = jax.random.PRNGKey(0)
    k1, k2 = jax.random.split(key)

    # Case 1: g capped by batch (g=4, m=1), single F tile, f32 input.
    x1 = jax.random.normal(k1, (4, 4, 16, 16), dtype=jnp.float32)
    out1 = jax.block_until_ready(minibatch_std_layer(x1, group_size=16, epsilon=1e-8))
    assert out1.shape == (4, 5, 16, 16), out1.shape
    ref1 = _reference(x1, group_size=16, epsilon=1e-8)
    assert jnp.allclose(out1, ref1, atol=1e-5, rtol=1e-5), "case 1 mismatch"

    # Case 2: m=2, tiled F (tile_f=512, 2 tiles) with a ragged last tile (f=768).
    x2 = jax.random.normal(k2, (8, 3, 16, 16), dtype=jnp.float32)
    out2 = jax.block_until_ready(
        minibatch_std_layer(x2, group_size=4, epsilon=1e-8, max_tile_bytes=512 * 8 * 4))
    ref2 = _reference(x2, group_size=4, epsilon=1e-8)
    assert out2.shape == (8, 4, 16, 16), out2.shape
    assert jnp.allclose(out2, ref2, atol=1e-5, rtol=1e-5), "case 2 mismatch"

    # Case 3: odd tile count (3 tiles, 2 splits) -> one clamped fully-masked tile.
    out3 = jax.block_until_ready(
        minibatch_std_layer(x2, group_size=4, epsilon=1e-8, max_tile_bytes=256 * 8 * 4))
    assert jnp.allclose(out3, ref2, atol=1e-5, rtol=1e-5), "case 3 mismatch"

    # Case 4: bf16 input stays bf16 on the DMA path, f32 math inside the kernel.
    x4 = x1.astype(jnp.bfloat16)
    out4 = jax.block_until_ready(minibatch_std_layer(x4, group_size=16, epsilon=1e-8))
    assert out4.shape == (4, 5, 16, 16), out4.shape
    ref4 = _reference(x4.astype(jnp.float32), group_size=16, epsilon=1e-8)
    assert jnp.allclose(out4.astype(jnp.float32), ref4, atol=2e-2, rtol=2e-2), "case 4 mismatch"

    print("KERNEL_OK")
</pallas_src>

<mosaic_0001>
module attributes {stable_mosaic.version = 11 : i64} {
  func.func @_mbstd_kernel(%arg0: i32, %arg1: i32, %arg2: memref<4x1x1024xf32, #tpu.memory_space<vmem>>, %arg3: memref<1x1x128xf32, #tpu.memory_space<vmem>>) attributes {dimension_semantics = [#tpu.dimension_semantics<parallel>, #tpu.dimension_semantics<arbitrary>], iteration_bounds = array<i64: 1, 1>, scalar_prefetch = 0 : i64, scratch_operands = 0 : i64, tpu.core_type = #tpu.core_type<tc>, window_params = [{transform_indices = @transform_0, window_bounds = array<i64: 4, 1, 1024>}, {transform_indices = @transform_1, window_bounds = array<i64: 1, 1, 128>}]} {
    %c1_i32 = arith.constant 1 : i32
    %0 = arith.muli %arg0, %c1_i32 : i32
    %1 = arith.addi %0, %arg1 : i32
    %c0 = arith.constant 0 : index
    %c0_0 = arith.constant 0 : index
    %c0_1 = arith.constant 0 : index
    %2 = vector.load %arg2[%c0, %c0_0, %c0_1] : memref<4x1x1024xf32, #tpu.memory_space<vmem>>, vector<4x1x1024xf32>
    %cst = arith.constant dense<0.000000e+00> : vector<1x1024xf32>
    %3 = vector.multi_reduction <add>, %2, %cst [0] : vector<4x1x1024xf32> to vector<1x1024xf32>
    %4 = vector.shape_cast %3 : vector<1x1024xf32> to vector<1x1x1024xf32>
    %cst_2 = arith.constant 4.000000e+00 : f32
    %5 = vector.broadcast %cst_2 : f32 to vector<1x1x1024xf32>
    %6 = arith.divf %4, %5 : vector<1x1x1024xf32>
    %7 = vector.broadcast %6 : vector<1x1x1024xf32> to vector<4x1x1024xf32>
    %8 = arith.subf %2, %7 : vector<4x1x1024xf32>
    %9 = arith.mulf %8, %8 : vector<4x1x1024xf32>
    %cst_3 = arith.constant dense<0.000000e+00> : vector<1x1024xf32>
    %10 = vector.multi_reduction <add>, %9, %cst_3 [0] : vector<4x1x1024xf32> to vector<1x1024xf32>
    %cst_4 = arith.constant 4.000000e+00 : f32
    %11 = vector.broadcast %cst_4 : f32 to vector<1x1024xf32>
    %12 = arith.divf %10, %11 : vector<1x1024xf32>
    %cst_5 = arith.constant 9.99999993E-9 : f32
    %13 = vector.broadcast %cst_5 : f32 to vector<1x1024xf32>
    %14 = arith.addf %12, %13 : vector<1x1024xf32>
    %15 = math.sqrt %14 : vector<1x1024xf32>
    %16 = tpu.iota {dimensions = array<i32: 1>} : vector<1x1024xi32>
    %c1024_i32 = arith.constant 1024 : i32
    %17 = arith.muli %1, %c1024_i32 : i32
    %18 = vector.broadcast %17 : i32 to vector<1x1024xi32>
    %19 = arith.addi %18, %16 : vector<1x1024xi32>
    %c1024_i32_6 = arith.constant 1024 : i32
    %20 = vector.broadcast %c1024_i32_6 : i32 to vector<1x1024xi32>
    %21 = arith.cmpi slt, %19, %20 : vector<1x1024xi32>
    %cst_7 = arith.constant 0.000000e+00 : f32
    %22 = vector.broadcast %cst_7 : f32 to vector<1x1024xf32>
    %23 = arith.select %21, %15, %22 : vector<1x1024xi1>, vector<1x1024xf32>
    %cst_8 = arith.constant dense<0.000000e+00> : vector<1xf32>
    %24 = vector.multi_reduction <add>, %23, %cst_8 [1] : vector<1x1024xf32> to vector<1xf32>
    %25 = vector.shape_cast %24 : vector<1xf32> to vector<1x1xf32>
    %c0_i32 = arith.constant 0 : i32
    %26 = arith.cmpi eq, %arg1, %c0_i32 : i32
    %27 = arith.extui %26 : i1 to i32
    %c0_i32_9 = arith.constant 0 : i32
    %28 = arith.cmpi ne, %27, %c0_i32_9 : i32
    scf.if %28 {
      %cst_16 = arith.constant 0.000000e+00 : f32
      %35 = vector.broadcast %cst_16 : f32 to vector<1x1x128xf32>
      %c0_17 = arith.constant 0 : index
      %c0_18 = arith.constant 0 : index
      %c0_19 = arith.constant 0 : index
      %36 = vector.load %arg3[%c0_17, %c0_18, %c0_19] : memref<1x1x128xf32, #tpu.memory_space<vmem>>, vector<1x1x128xf32>
      tpu.vector_store %arg3[%c0_17, %c0_18, %c0_19], %35 {strides = array<i32>} : memref<1x1x128xf32, #tpu.memory_space<vmem>>, vector<1x1x128xf32>,
    } else {
    }
    %c0_10 = arith.constant 0 : index
    %c0_11 = arith.constant 0 : index
    %c0_12 = arith.constant 0 : index
    %29 = vector.load %arg3[%c0_10, %c0_11, %c0_12] : memref<1x1x128xf32, #tpu.memory_space<vmem>>, vector<1x1x128xf32>
    %30 = vector.shape_cast %25 : vector<1x1xf32> to vector<1x1xf32>
    %31 = vector.broadcast %30 : vector<1x1xf32> to vector<1x128xf32>
    %32 = vector.shape_cast %31 : vector<1x128xf32> to vector<1x1x128xf32>
    %33 = arith.addf %29, %32 : vector<1x1x128xf32>
    %c0_13 = arith.constant 0 : index
    %c0_14 = arith.constant 0 : index
    %c0_15 = arith.constant 0 : index
    %34 = vector.load %arg3[%c0_13, %c0_14, %c0_15] : memref<1x1x128xf32, #tpu.memory_space<vmem>>, vector<1x1x128xf32>
    tpu.vector_store %arg3[%c0_13, %c0_14, %c0_15], %33 {strides = array<i32>} : memref<1x1x128xf32, #tpu.memory_space<vmem>>, vector<1x1x128xf32>,
    return
  }
  func.func @transform_0(%arg0: i32, %arg1: i32) -> (i32, i32, i32) {
    %c1_i32 = arith.constant 1 : i32
    %0 = arith.muli %arg0, %c1_i32 : i32
    %1 = arith.addi %0, %arg1 : i32
    %c0_i32 = arith.constant 0 : i32
    %2 = arith.minsi %1, %c0_i32 : i32
    %c0_i32_0 = arith.constant 0 : i32
    %c0_i32_1 = arith.constant 0 : i32
    %c0_i32_2 = arith.constant 0 : i32
    return %c0_i32_0, %c0_i32_1, %2 : i32, i32, i32
  }
  func.func @transform_1(%arg0: i32, %arg1: i32) -> (i32, i32, i32) {
    %c0_i32 = arith.constant 0 : i32
    %c0_i32_0 = arith.constant 0 : i32
    %c0_i32_1 = arith.constant 0 : i32
    return %arg0, %c0_i32, %c0_i32_0 : i32, i32, i32
  }
}

</mosaic_0001>

<bundles_post_ra>
// kernel: minibatch_std_layer.1
= control target key start
LH: loop header
LB: loop body
LE: loop exit
PB: predicated region body
PF: predicated region fallthrough
CT: control target
= control target key end

     0   :  { %v46_v0 = vlaneseq  ;;  %v715_v1 = vmov 1966171168   ;;  %vm206_vm0 = vcmask 1040384   ;;  %s1084_s0 = inlined_call_operand.vmem [shape: f32[4,1,1024], index: 0, kind: input, shape index: {}]   ;;  %s1085_s1 = inlined_call_operand.vmem [shape: f32[1,1,128], index: 1, kind: output, shape index: {}]  }
   0x1   :  { %v727_v2 = vunpack.c.l.s4 %v715_v1  ;;  %v734_v4 = vld [vmem:[%s1084_s0] sm:$0xff]  ;;  %v752_v10 = vld [vmem:[%s1084_s0 + $0x8] sm:$0xff]  ;;  %v777_v19 = vld [vmem:[%s1084_s0 + $0x10] sm:$0xff] }
   0x2   :  { %v729_v3 = vshrl.u32 %v46_v0, 7  ;;  %v798_v28 = vld [vmem:[%s1084_s0 + $0x18] sm:$0xff] }
   0x3   :  { %v286_v5 = vunpack.c.0.s8 %v727_v2 }
   0x4   :  { %v738_v6 = vsub.s32 0, %v729_v3  ;;  %v741_v7 = vsub.s32 1, %v729_v3  ;;  %v744_v8 = vsub.s32 2, %v729_v3  ;;  %v747_v9 = vsub.s32 3, %v729_v3 }
   0x5   :  { %v755_v11 = vsub.s32 4, %v729_v3  ;;  %v758_v12 = vsub.s32 5, %v729_v3  ;;  %v761_v13 = vsub.s32 6, %v729_v3  ;;  %v764_v14 = vsub.s32 7, %v729_v3 }
   0x6   :  { %v49_v15 = vrot.slane %v734_v4, %v738_v6  ;;  %v53_v16 = vrot.slane %v734_v4, %v741_v7  ;;  %v57_v17 = vrot.slane %v734_v4, %v744_v8  ;;  %v61_v18 = vrot.slane %v734_v4, %v747_v9 }
   0x7   :  { %v65_v20 = vrot.slane %v734_v4, %v755_v11  ;;  %v69_v21 = vrot.slane %v734_v4, %v758_v12  ;;  %v73_v22 = vrot.slane %v734_v4, %v761_v13  ;;  %v77_v23 = vrot.slane %v734_v4, %v764_v14 }
   0x8   :  { %v81_v24 = vrot.slane %v752_v10, %v738_v6  ;;  %v85_v25 = vrot.slane %v752_v10, %v741_v7  ;;  %v89_v26 = vrot.slane %v752_v10, %v744_v8  ;;  %v93_v27 = vrot.slane %v752_v10, %v747_v9 }
   0x9   :  { %v97_v29 = vrot.slane %v752_v10, %v755_v11  ;;  %v101_v30 = vrot.slane %v752_v10, %v758_v12  ;;  %v105_v31 = vrot.slane %v752_v10, %v761_v13  ;;  %v109_v32 = vrot.slane %v752_v10, %v764_v14 }
   0xa   :  { %v113_v33 = vrot.slane %v777_v19, %v738_v6  ;;  %v117_v34 = vrot.slane %v777_v19, %v741_v7  ;;  %v121_v35 = vrot.slane %v777_v19, %v744_v8  ;;  %v125_v36 = vrot.slane %v777_v19, %v747_v9 }
   0xb   :  { %v129_v37 = vrot.slane %v777_v19, %v755_v11  ;;  %v133_v38 = vrot.slane %v777_v19, %v758_v12  ;;  %v137_v39 = vrot.slane %v777_v19, %v761_v13  ;;  %v141_v40 = vrot.slane %v777_v19, %v764_v14 }
   0xc   :  { %v145_v41 = vrot.slane %v798_v28, %v738_v6  ;;  %v149_v42 = vrot.slane %v798_v28, %v741_v7  ;;  %v153_v43 = vrot.slane %v798_v28, %v744_v8  ;;  %v157_v44 = vrot.slane %v798_v28, %v747_v9 }
   0xd   :  { %v161_v45 = vrot.slane %v798_v28, %v755_v11  ;;  %v165_v46 = vrot.slane %v798_v28, %v758_v12  ;;  %v169_v47 = vrot.slane %v798_v28, %v761_v13  ;;  %v173_v48 = vrot.slane %v798_v28, %v764_v14 }
   0xe   :  { %v207_v49 = vsel %vm206_vm0, %v49_v15, 0.0  ;;  %v208_v50 = vsel %vm206_vm0, %v81_v24, 0.0  ;;  %v210_v51 = vsel %vm206_vm0, %v113_v33, 0.0  ;;  %v212_v52 = vsel %vm206_vm0, %v145_v41, 0.0 }
   0xf   :  { %v209_v53 = vadd.f32 %v208_v50, %v207_v49  ;;  %v214_v54 = vsel %vm206_vm0, %v53_v16, 0.0  ;;  %v215_v55 = vsel %vm206_vm0, %v85_v25, 0.0  ;;  %v217_v56 = vsel %vm206_vm0, %v117_v34, 0.0 }
  0x10   :  { %v216_v57 = vadd.f32 %v215_v55, %v214_v54  ;;  %v219_v58 = vsel %vm206_vm0, %v149_v42, 0.0  ;;  %v221_v59 = vsel %vm206_vm0, %v57_v17, 0.0  ;;  %v222_v60 = vsel %vm206_vm0, %v89_v26, 0.0 }
  0x11   :  { %v211_v61 = vadd.f32 %v210_v51, %v209_v53  ;;  %v223_v62 = vadd.f32 %v222_v60, %v221_v59  ;;  %v224_v63 = vsel %vm206_vm0, %v121_v35, 0.0  ;;  %v226_v0 = vsel %vm206_vm0, %v153_v43, 0.0 }
  0x12   :  { %v218_v1 = vadd.f32 %v217_v56, %v216_v57  ;;  %v228_v15 = vsel %vm206_vm0, %v61_v18, 0.0  ;;  %v229_v16 = vsel %vm206_vm0, %v93_v27, 0.0  ;;  %v231_v24 = vsel %vm206_vm0, %v125_v36, 0.0 }
  0x13   :  { %v213_v25 = vadd.f32 %v212_v52, %v211_v61  ;;  %v225_v33 = vadd.f32 %v224_v63, %v223_v62  ;;  %v230_v34 = vadd.f32 %v229_v16, %v228_v15  ;;  %v233_v17 = vsel %vm206_vm0, %v157_v44, 0.0 }
  0x14   :  { %v220_v41 = vadd.f32 %v219_v58, %v218_v1  ;;  %v235_v26 = vsel %vm206_vm0, %v65_v20, 0.0  ;;  %v236_v42 = vsel %vm206_vm0, %v97_v29, 0.0  ;;  %v238_v35 = vsel %vm206_vm0, %v129_v37, 0.0 }
  0x15   :  { %v227_v43 = vadd.f32 %v226_v0, %v225_v33  ;;  %v232_v49 = vadd.f32 %v231_v24, %v230_v34  ;;  %v237_v50 = vadd.f32 %v236_v42, %v235_v26  ;;  %v240_v18 = vsel %vm206_vm0, %v161_v45, 0.0 }
  0x16   :  { %v242_v27 = vsel %vm206_vm0, %v69_v21, 0.0  ;;  %v243_v36 = vsel %vm206_vm0, %v101_v30, 0.0  ;;  %v245_v51 = vsel %vm206_vm0, %v133_v38, 0.0  ;;  %v247_v44 = vsel %vm206_vm0, %v165_v46, 0.0 }
  0x17   :  { %v234_v52 = vadd.f32 %v233_v17, %v232_v49  ;;  %v239_v53 = vadd.f32 %v238_v35, %v237_v50  ;;  %v244_v20 = vadd.f32 %v243_v36, %v242_v27  ;;  %v249_v29 = vsel %vm206_vm0, %v73_v22, 0.0 }
  0x18   :  { %v250_v37 = vsel %vm206_vm0, %v105_v31, 0.0  ;;  %v252_v45 = vsel %vm206_vm0, %v137_v39, 0.0  ;;  %v254_v21 = vsel %vm206_vm0, %v169_v47, 0.0  ;;  %v256_v30 = vsel %vm206_vm0, %v77_v23, 0.0 }
  0x19   :  { %v241_v38 = vadd.f32 %v240_v18, %v239_v53  ;;  %v246_v46 = vadd.f32 %v245_v51, %v244_v20  ;;  %v251_v54 = vadd.f32 %v250_v37, %v249_v29  ;;  %v257_v55 = vsel %vm206_vm0, %v109_v32, 0.0 }
  0x1a   :  { %v258_v22 = vadd.f32 %v257_v55, %v256_v30  ;;  %v259_v31 = vsel %vm206_vm0, %v141_v40, 0.0  ;;  %v261_v39 = vsel %vm206_vm0, %v173_v48, 0.0  ;;  %v264_v56 = vmul.f32 0.25, %v213_v25 }
  0x1b   :  { %v248_v47 = vadd.f32 %v247_v44, %v246_v46  ;;  %v253_v57 = vadd.f32 %v252_v45, %v251_v54  ;;  %v265_v58 = vmul.f32 0.25, %v220_v41  ;;  %v266_v59 = vmul.f32 0.25, %v227_v43 }
  0x1c   :  { %v260_v60 = vadd.f32 %v259_v31, %v258_v22  ;;  %v267_v23 = vmul.f32 0.25, %v234_v52  ;;  %v268_v61 = vmul.f32 0.25, %v241_v38  ;;  %v289_v62 = vsub.s32 %v286_v5, %v729_v3 }
  0x1d   :  { %v255_v63 = vadd.f32 %v254_v21, %v253_v57  ;;  %v269_v0 = vmul.f32 0.25, %v248_v47  ;;  %v280_v32 = vcombine.low %v264_v56, %v265_v58 }
  0x1e   :  { %v262_v1 = vadd.f32 %v261_v39, %v260_v60  ;;  %v281_v15 = vcombine.low %v266_v59, %v267_v23 }
  0x1f   :  { %v270_v40 = vmul.f32 0.25, %v255_v63  ;;  %v282_v16 = vcombine.low %v268_v61, %v269_v0  ;;  %v290_v48 = vrot.slane %v280_v32, %v289_v62 }
  0x20   :  { %v271_v24 = vmul.f32 0.25, %v262_v1  ;;  %v297_v25 = vrot.slane %v281_v15, %v289_v62 }
  0x21   :  { %v304_v34 = vrot.slane %v282_v16, %v289_v62 }
  0x22   :  { %v283_v33 = vcombine.low %v270_v40, %v271_v24  ;;  %v312_v17 = vcombine.low %v290_v48, %v297_v25 }
  0x24   :  { %v311_v41 = vrot.slane %v283_v33, %v289_v62  ;;  %v320_v42 = vrot.slane %v312_v17, %v289_v62 }
  0x26   :  { %v313_v26 = vcombine.low %v304_v34, %v311_v41 }
  0x28   :  { %v327_v35 = vrot.slane %v313_v26, %v289_v62 }
  0x2a   :  { %v328_v43 = vcombine.low %v320_v42, %v327_v35 }
  0x2c   :  { %v330_v2 = vsub.f32 %v734_v4, %v328_v43  ;;  %v331_v3 = vsub.f32 %v752_v10, %v328_v43  ;;  %v332_v5 = vsub.f32 %v777_v19, %v328_v43  ;;  %v333_v49 = vsub.f32 %v798_v28, %v328_v43 }
  0x2e   :  { %v888_v50 = vmul.f32 %v330_v2, %v330_v2  ;;  %v890_v18 = vmul.f32 %v331_v3, %v331_v3  ;;  %v892_v27 = vmul.f32 %v332_v5, %v332_v5  ;;  %v894_v36 = vmul.f32 %v333_v49, %v333_v49 }
  0x30   :  { %v345_v51 = vrot.slane %v888_v50, %v738_v6  ;;  %v349_v4 = vrot.slane %v888_v50, %v741_v7  ;;  %v353_v10 = vrot.slane %v888_v50, %v744_v8  ;;  %v357_v19 = vrot.slane %v888_v50, %v747_v9 }
  0x31   :  { %v361_v28 = vrot.slane %v888_v50, %v755_v11  ;;  %v365_v44 = vrot.slane %v888_v50, %v758_v12  ;;  %v369_v52 = vrot.slane %v888_v50, %v761_v13  ;;  %v373_v53 = vrot.slane %v888_v50, %v764_v14 }
  0x32   :  { %v377_v20 = vrot.slane %v890_v18, %v738_v6  ;;  %v381_v29 = vrot.slane %v890_v18, %v741_v7  ;;  %v385_v37 = vrot.slane %v890_v18, %v744_v8  ;;  %v389_v45 = vrot.slane %v890_v18, %v747_v9 }
  0x33   :  { %v393_v21 = vrot.slane %v890_v18, %v755_v11  ;;  %v397_v30 = vrot.slane %v890_v18, %v758_v12  ;;  %v401_v38 = vrot.slane %v890_v18, %v761_v13  ;;  %v405_v46 = vrot.slane %v890_v18, %v764_v14 }
  0x34   :  { %v409_v54 = vrot.slane %v892_v27, %v738_v6  ;;  %v413_v55 = vrot.slane %v892_v27, %v741_v7  ;;  %v417_v22 = vrot.slane %v892_v27, %v744_v8  ;;  %v421_v31 = vrot.slane %v892_v27, %v747_v9 }
  0x35   :  { %v425_v39 = vrot.slane %v892_v27, %v755_v11  ;;  %v429_v56 = vrot.slane %v892_v27, %v758_v12  ;;  %v433_v47 = vrot.slane %v892_v27, %v761_v13  ;;  %v437_v57 = vrot.slane %v892_v27, %v764_v14 }
  0x36   :  { %v441_v58 = vrot.slane %v894_v36, %v738_v6  ;;  %v445_v59 = vrot.slane %v894_v36, %v741_v7  ;;  %v449_v60 = vrot.slane %v894_v36, %v744_v8  ;;  %v453_v23 = vrot.slane %v894_v36, %v747_v9 }
  0x37   :  { %v457_v61 = vrot.slane %v894_v36, %v755_v11  ;;  %v461_v62 = vrot.slane %v894_v36, %v758_v12  ;;  %v465_v63 = vrot.slane %v894_v36, %v761_v13  ;;  %v469_v6 = vrot.slane %v894_v36, %v764_v14 }
  0x38   :  { %v502_v7 = vsel %vm206_vm0, %v345_v51, 0.0  ;;  %v503_v0 = vsel %vm206_vm0, %v377_v20, 0.0  ;;  %v505_v8 = vsel %vm206_vm0, %v409_v54, 0.0  ;;  %v507_v9 = vsel %vm206_vm0, %v441_v58, 0.0 }
  0x39   :  { %v504_v32 = vadd.f32 %v503_v0, %v502_v7  ;;  %v509_v11 = vsel %vm206_vm0, %v349_v4, 0.0  ;;  %v510_v1 = vsel %vm206_vm0, %v381_v29, 0.0  ;;  %v512_v12 = vsel %vm206_vm0, %v413_v55, 0.0 }
  0x3a   :  { %v511_v15 = vadd.f32 %v510_v1, %v509_v11  ;;  %v514_v40 = vsel %vm206_vm0, %v445_v59, 0.0  ;;  %v516_v16 = vsel %vm206_vm0, %v353_v10, 0.0  ;;  %v517_v48 = vsel %vm206_vm0, %v385_v37, 0.0 }
  0x3b   :  { %v506_v24 = vadd.f32 %v505_v8, %v504_v32  ;;  %v518_v25 = vadd.f32 %v517_v48, %v516_v16  ;;  %v519_v33 = vsel %vm206_vm0, %v417_v22, 0.0  ;;  %v521_v34 = vsel %vm206_vm0, %v449_v60, 0.0 }
  0x3c   :  { %v513_v17 = vadd.f32 %v512_v12, %v511_v15  ;;  %v523_v41 = vsel %vm206_vm0, %v357_v19, 0.0  ;;  %v524_v26 = vsel %vm206_vm0, %v389_v45, 0.0  ;;  %v526_v42 = vsel %vm206_vm0, %v421_v31, 0.0 }
  0x3d   :  { %v508_v35 = vadd.f32 %v507_v9, %v506_v24  ;;  %v520_v43 = vadd.f32 %v519_v33, %v518_v25  ;;  %v525_v2 = vadd.f32 %v524_v26, %v523_v41  ;;  %v528_v3 = vsel %vm206_vm0, %v453_v23, 0.0 }
  0x3e   :  { %v515_v5 = vadd.f32 %v514_v40, %v513_v17  ;;  %v530_v49 = vsel %vm206_vm0, %v361_v28, 0.0  ;;  %v531_v27 = vsel %vm206_vm0, %v393_v21, 0.0  ;;  %v533_v36 = vsel %vm206_vm0, %v425_v39, 0.0 }
  0x3f   :  { %v522_v51 = vadd.f32 %v521_v34, %v520_v43  ;;  %v527_v4 = vadd.f32 %v526_v42, %v525_v2  ;;  %v532_v10 = vadd.f32 %v531_v27, %v530_v49  ;;  %v535_v19 = vsel %vm206_vm0, %v457_v61, 0.0 }
  0x40   :  { %v537_v20 = vsel %vm206_vm0, %v365_v44, 0.0  ;;  %v538_v29 = vsel %vm206_vm0, %v397_v30, 0.0  ;;  %v540_v37 = vsel %vm206_vm0, %v429_v56, 0.0  ;;  %v542_v45 = vsel %vm206_vm0, %v461_v62, 0.0 }
  0x41   :  { %v529_v54 = vadd.f32 %v528_v3, %v527_v4  ;;  %v534_v55 = vadd.f32 %v533_v36, %v532_v10  ;;  %v539_v28 = vadd.f32 %v538_v29, %v537_v20  ;;  %v544_v21 = vsel %vm206_vm0, %v369_v52, 0.0 }
  0x42   :  { %v545_v22 = vsel %vm206_vm0, %v401_v38, 0.0  ;;  %v547_v31 = vsel %vm206_vm0, %v433_v47, 0.0  ;;  %v549_v44 = vsel %vm206_vm0, %v465_v63, 0.0  ;;  %v551_v30 = vsel %vm206_vm0, %v373_v53, 0.0 }
  0x43   :  { %v536_v39 = vadd.f32 %v535_v19, %v534_v55  ;;  %v541_v56 = vadd.f32 %v540_v37, %v539_v28  ;;  %v546_v58 = vadd.f32 %v545_v22, %v544_v21  ;;  %v552_v13 = vsel %vm206_vm0, %v405_v46, 0.0 }
  0x44   :  { %v553_v52 = vadd.f32 %v552_v13, %v551_v30  ;;  %v554_v38 = vsel %vm206_vm0, %v437_v57, 0.0  ;;  %v556_v47 = vsel %vm206_vm0, %v469_v6, 0.0  ;;  %v558_v59 = vmul.f32 0.25, %v508_v35 }
  0x45   :  { %v543_v60 = vadd.f32 %v542_v45, %v541_v56  ;;  %v548_v23 = vadd.f32 %v547_v31, %v546_v58  ;;  %v559_v61 = vmul.f32 0.25, %v515_v5  ;;  %v560_v50 = vmul.f32 0.25, %v522_v51 }
  0x46   :  { %v555_v62 = vadd.f32 %v554_v38, %v553_v52  ;;  %v561_v53 = vmul.f32 0.25, %v529_v54  ;;  %v562_v63 = vmul.f32 0.25, %v536_v39  ;;  %v566_v7 = vadd.f32 1e-08, %v558_v59 }
  0x47   :  { %v550_v0 = vadd.f32 %v549_v44, %v548_v23  ;;  %v563_v8 = vmul.f32 0.25, %v543_v60  ;;  %v567_v9 = vadd.f32 1e-08, %v559_v61  ;;  %v568_v14 = vadd.f32 1e-08, %v560_v50 }
  0x48   :  { %v557_v18 = vadd.f32 %v556_v47, %v555_v62  ;;  %699 = vrsqrt.f32 %v566_v7  ;;  %v1001_v32 = vadd.f32 1e-08, %v561_v53  ;;  %v1003_v6 = vadd.f32 1e-08, %v562_v63 }
  0x49   :  { %v564_v46 = vmul.f32 0.25, %v550_v0  ;;  %701 = vrsqrt.f32 %v567_v9  ;;  %v1005_v11 = vadd.f32 1e-08, %v563_v8  ;;  %vm576_vm1 = vcmp.eq.f32.partialorder %v566_v7, inf }
  0x4a   :  { %v565_v57 = vmul.f32 0.25, %v557_v18  ;;  %703 = vrsqrt.f32 %v568_v14  ;;  %vm578_vm2 = vcmp.eq.f32.partialorder %v566_v7, 0.0  ;;  %v579_v15 = vand.u32 2147483648, %v566_v7 }
  0x4b   :  { %v1007_v1 = vadd.f32 1e-08, %v564_v46  ;;  %705 = vrsqrt.f32 %v1001_v32  ;;  %vm583_vm3 = vcmp.eq.f32.partialorder %v567_v9, inf  ;;  %vm585_vm4 = vcmp.eq.f32.partialorder %v567_v9, 0.0 }
  0x4c   :  { %v1009_v12 = vadd.f32 1e-08, %v565_v57  ;;  %707 = vrsqrt.f32 %v1003_v6  ;;  %v586_v16 = vand.u32 2147483648, %v567_v9  ;;  %vm590_vm5 = vcmp.eq.f32.partialorder %v568_v14, inf }
  0x4d   :  { %709 = vrsqrt.f32 %v1005_v11  ;;  %vm592_vm6 = vcmp.eq.f32.partialorder %v568_v14, 0.0  ;;  %v593_v24 = vand.u32 2147483648, %v568_v14  ;;  %vm597_vm7 = vcmp.eq.f32.partialorder %v1001_v32, inf }
  0x4e   :  { %711 = vrsqrt.f32 %v1007_v1  ;;  %vm599_vm8 = vcmp.eq.f32.partialorder %v1001_v32, 0.0  ;;  %v600_v33 = vand.u32 2147483648, %v1001_v32  ;;  %vm604_vm9 = vcmp.eq.f32.partialorder %v1003_v6, inf }
  0x4f   :  { %713 = vrsqrt.f32 %v1009_v12  ;;  %vm606_vm10 = vcmp.eq.f32.partialorder %v1003_v6, 0.0  ;;  %v607_v34 = vand.u32 2147483648, %v1003_v6  ;;  %vm611_vm11 = vcmp.eq.f32.partialorder %v1005_v11, inf }
  0x50   :  { %vm613_vm12 = vcmp.eq.f32.partialorder %v1005_v11, 0.0  ;;  %v614_v43 = vand.u32 2147483648, %v1005_v11  ;;  %vm618_vm13 = vcmp.eq.f32.partialorder %v1007_v1, inf  ;;  %vm620_vm14 = vcmp.eq.f32.partialorder %v1007_v1, 0.0 }
  0x51   :  { %v621_v5 = vand.u32 2147483648, %v1007_v1  ;;  %vm625_vm15 = vcmp.eq.f32.partialorder %v1009_v12, inf  ;;  %v628_v30 = vand.u32 2147483648, %v1009_v12 }
  0x55   :  { %v700_v40 = vpop.eup %699 }
  0x56   :  { %v575_v48 = vmul.f32 %v700_v40, %v566_v7  ;;  %v702_v25 = vpop.eup %701 }
  0x57   :  { %v704_v17 = vpop.eup %703  ;;  %v582_v26 = vmul.f32 %v702_v25, %v567_v9 }
  0x58   :  { %v577_v41 = vsel %vm576_vm1, %v566_v7, %v575_v48  ;;  %v589_v35 = vmul.f32 %v704_v17, %v568_v14  ;;  %v706_v2 = vpop.eup %705  ;;  %vm627_vm1 = vcmp.eq.f32.partialorder %v1009_v12, 0.0 }
  0x59   :  { %v580_v42 = vsel %vm578_vm2, %v579_v15, %v577_v41  ;;  %v584_v3 = vsel %vm583_vm3, %v567_v9, %v582_v26  ;;  %v708_v27 = vpop.eup %707  ;;  %v596_v4 = vmul.f32 %v706_v2, %v1001_v32 }
  0x5a   :  { %v665_v49 = vsel %vm206_vm0, %v580_v42, 0.0  ;;  %v587_v36 = vsel %vm585_vm4, %v586_v16, %v584_v3  ;;  %v591_v51 = vsel %vm590_vm5, %v568_v14, %v589_v35  ;;  %v710_v10 = vpop.eup %709  ;;  %v603_v20 = vmul.f32 %v708_v27, %v1003_v6 }
  0x5b   :  { %v594_v19 = vsel %vm592_vm6, %v593_v24, %v591_v51  ;;  %v666_v29 = vsel %vm206_vm0, %v587_v36, 0.0  ;;  %v712_v37 = vpop.eup %711  ;;  %v598_v45 = vsel %vm597_vm7, %v1001_v32, %v596_v4  ;;  %v610_v54 = vmul.f32 %v710_v10, %v1005_v11 }
  0x5c   :  { %v667_v55 = vadd.f32 %v666_v29, %v665_v49  ;;  %v668_v28 = vsel %vm206_vm0, %v594_v19, 0.0  ;;  %v714_v21 = vpop.eup %713  ;;  %v601_v22 = vsel %vm599_vm8, %v600_v33, %v598_v45  ;;  %v605_v31 = vsel %vm604_vm9, %v1003_v6, %v603_v20 }
  0x5d   :  { %v617_v44 = vmul.f32 %v712_v37, %v1007_v1  ;;  %v608_v39 = vsel %vm606_vm10, %v607_v34, %v605_v31  ;;  %v612_v56 = vsel %vm611_vm11, %v1005_v11, %v610_v54  ;;  %v624_v58 = vmul.f32 %v714_v21, %v1009_v12 }
  0x5e   :  { %v669_v13 = vadd.f32 %v668_v28, %v667_v55  ;;  %v615_v52 = vsel %vm613_vm12, %v614_v43, %v612_v56  ;;  %v670_v47 = vsel %vm206_vm0, %v601_v22, 0.0  ;;  %v672_v59 = vsel %vm206_vm0, %v608_v39, 0.0 }
  0x5f   :  { %v619_v38 = vsel %vm618_vm13, %v1007_v1, %v617_v44  ;;  %v626_v23 = vsel %vm625_vm15, %v1009_v12, %v624_v58  ;;  %v674_v50 = vsel %vm206_vm0, %v615_v52, 0.0  ;;  %v716_v14 = vmov 0.0  }
  0x60   :  { %v622_v60 = vsel %vm620_vm14, %v621_v5, %v619_v38  ;;  %v671_v61 = vadd.f32 %v670_v47, %v669_v13  ;;  %v629_v62 = vsel %vm627_vm1, %v628_v30, %v626_v23  ;;  %686 = vst [vmem:[%s1085_s1] sm:$0x1] %v716_v14 }
  0x61   :  { %v676_v63 = vsel %vm206_vm0, %v622_v60, 0.0  ;;  %v678_v0 = vsel %vm206_vm0, %v629_v62, 0.0 }
  0x62   :  { %v673_v53 = vadd.f32 %v672_v59, %v671_v61 }
  0x64   :  { %v675_v7 = vadd.f32 %v674_v50, %v673_v53 }
  0x66   :  { %v677_v8 = vadd.f32 %v676_v63, %v675_v7 }
  0x67   :  { %v687_v18 = vld [vmem:[%s1085_s1] sm:$0x1] }
  0x68   :  { %v679_v9 = vadd.f32 %v678_v0, %v677_v8 }
  0x6a   :  { %680 = vadd.xlane.f32.xlu0 %v679_v9 }
  0xf3   :  { %v681_v46 = vpop.xlane.xlu0 %680 }
  0xf4   :  { %v688_v32 = vadd.f32 %v687_v18, %v681_v46 }
  0xf6   :  { %689 = vst [vmem:[%s1085_s1] sm:$0x1] %v688_v32 }

</bundles_post_ra>
